<compile_context>
chip_gen: v7x
topology: tpu7x:2x2x1
jax: 0.10.0
libtpu: 0.0.40
codegen_flags: <defaults>
</compile_context>

<pallas_src>
import functools
import math

import jax
import jax.numpy as jnp
from jax.experimental import pallas as pl
from jax.experimental.pallas import tpu as pltpu

_LN2 = math.log(2.0)


def _margin_loss_kernel(f_ref, ct_ref, l_ref, o_ref, *, true_b, inv_den):
    feats = f_ref[...]            # (TILE_B, D) f32
    cents_t = ct_ref[...]         # (D, C)      f32  (centers transposed)
    labels = l_ref[...]           # (TILE_B, 1) i32

    tile_b, d_dim = feats.shape
    c_dim = cents_t.shape[1]

    # Pairwise L1 distance accumulated over the feature dimension.
    # Compile-time-unrolled loop -> no (B, C, D) intermediate, class axis
    # stays lane-dense, live state is O(TILE_B * C).
    pair_dist = jnp.zeros((tile_b, c_dim), dtype=jnp.float32)
    for d in range(d_dim):
        pair_dist = pair_dist + jnp.abs(feats[:, d:d + 1] - cents_t[d:d + 1, :])

    # One-hot of labels along the class axis (used only to gather the
    # own-center distance; the GT-class mask itself is constant-folded below).
    classes = jax.lax.broadcasted_iota(jnp.int32, (tile_b, c_dim), 1)
    onehot = (labels == classes).astype(jnp.float32)                  # (TILE_B, C)

    # center_dist[b] = pair_dist[b, labels[b]]   (exact masked-sum gather)
    center_dist = (pair_dist * onehot).sum(axis=1, keepdims=True)     # (TILE_B, 1)

    # feature_center_dist and stable softplus over all classes.
    fcd = center_dist - pair_dist                                     # (TILE_B, C)
    sp = jnp.logaddexp(fcd, 0.0)                                      # softplus

    # Constant-folded mask: fcd at the true class is exactly 0 (center_dist is
    # gathered from pair_dist itself), so its softplus is ln(2). Subtract
    # ln(2) per valid row instead of multiplying by (1 - onehot). Padded rows
    # (from batch padding) are masked out entirely.
    row_idx = (pl.program_id(0) * tile_b
               + jax.lax.broadcasted_iota(jnp.int32, (tile_b, 1), 0))
    row_valid = (row_idx < true_b).astype(jnp.float32)                # (TILE_B, 1)

    row_sums = sp.sum(axis=1, keepdims=True)                          # (TILE_B, 1)
    tile_sum = jnp.sum((row_sums - _LN2) * row_valid) * inv_den       # scalar

    # Lane-dense, unmasked store of the per-tile partial result.
    o_ref[...] = jnp.full(o_ref.shape, tile_sum, dtype=jnp.float32)


def margin_loss(features, centers, labels):
    """features: (B, D), centers: (C, D), labels: (B,) int -> scalar f32 loss."""
    b, d = features.shape
    c, _ = centers.shape

    features = features.astype(jnp.float32)
    centers_t = centers.astype(jnp.float32).T                # (D, C): classes on lanes
    labels2d = labels.astype(jnp.int32).reshape(b, 1)

    # Batch tiling: TILE_B is a multiple of 8 sublanes; pad B up to it.
    tile_b = min(256, ((b + 7) // 8) * 8)
    b_pad = ((b + tile_b - 1) // tile_b) * tile_b
    if b_pad != b:
        features = jnp.pad(features, ((0, b_pad - b), (0, 0)))
        labels2d = jnp.pad(labels2d, ((0, b_pad - b), (0, 0)))
    num_tiles = b_pad // tile_b

    # mask.sum() == B*(C-1): compile-time constant (C==1 divides by zero, same
    # as the PyTorch module).
    inv_den = 1.0 / float(b * (c - 1))

    kernel = functools.partial(_margin_loss_kernel, true_b=b, inv_den=inv_den)

    partials = pl.pallas_call(
        kernel,
        grid=(num_tiles,),
        in_specs=[
            pl.BlockSpec((tile_b, d), lambda i: (i, 0)),     # features tile
            pl.BlockSpec((d, c), lambda i: (0, 0)),          # full transposed centers
            pl.BlockSpec((tile_b, 1), lambda i: (i, 0)),     # labels tile
        ],
        out_specs=pl.BlockSpec((1, 8, 128), lambda i: (i, 0, 0)),
        out_shape=jax.ShapeDtypeStruct((num_tiles, 8, 128), jnp.float32),
        compiler_params=pltpu.CompilerParams(
            dimension_semantics=("parallel",)),
    )(features, centers_t, labels2d)

    # Tiny final reduction over the per-tile partial sums.
    return partials[:, 0, 0].sum()


def margin_loss_ref(features, centers, labels):
    """Pure-JAX reference mirroring the PyTorch forward."""
    b, _ = features.shape
    c = centers.shape[0]
    centers_batch = centers[labels]                                     # (B, D)
    center_dist = jnp.abs(features - centers_batch).sum(axis=1)         # (B,)
    pair_dist = jnp.abs(features[:, None, :] - centers[None, :, :]).sum(axis=2)  # (B, C)
    fcd = center_dist[:, None] - pair_dist
    classes = jnp.arange(c)
    mask = (labels[:, None] != classes[None, :]).astype(jnp.float32)
    sp = jnp.logaddexp(fcd, 0.0)
    return (sp * mask).sum() / mask.sum()


if __name__ == "__main__":
    num_classes = 10
    feat_dim = 10
    batch = 8

    key = jax.random.PRNGKey(0)
    k_feat, k_cent, k_lab = jax.random.split(key, 3)

    features = jax.random.normal(k_feat, (batch, feat_dim), dtype=jnp.float32)
    # nn.Parameter(torch.randn(num_classes, feat_dim)) -> deterministic normal init
    centers = jax.random.normal(k_cent, (num_classes, feat_dim), dtype=jnp.float32)
    labels = jax.random.randint(k_lab, (batch,), 0, num_classes, dtype=jnp.int32)

    loss = margin_loss(features, centers, labels)
    loss = jax.block_until_ready(loss)

    ref = margin_loss_ref(features, centers, labels)
    assert jnp.allclose(loss, ref, rtol=1e-5, atol=1e-5), (loss, ref)

    print("KERNEL_OK")
</pallas_src>

<mosaic_0001>
module attributes {stable_mosaic.version = 11 : i64} {
  func.func @_margin_loss_kernel(%arg0: i32, %arg1: memref<8x10xf32, #tpu.memory_space<vmem>>, %arg2: memref<10x10xf32, #tpu.memory_space<vmem>>, %arg3: memref<8x1xi32, #tpu.memory_space<vmem>>, %arg4: memref<1x8x128xf32, #tpu.memory_space<vmem>>) attributes {dimension_semantics = [#tpu.dimension_semantics<parallel>], iteration_bounds = array<i64: 1>, scalar_prefetch = 0 : i64, scratch_operands = 0 : i64, tpu.core_type = #tpu.core_type<tc>, window_params = [{transform_indices = @transform_0, window_bounds = array<i64: 8, 10>}, {pipeline_mode = #tpu.pipeline_mode<synchronous>, transform_indices = @transform_1, window_bounds = array<i64: 10, 10>}, {transform_indices = @transform_2, window_bounds = array<i64: 8, 1>}, {transform_indices = @transform_3, window_bounds = array<i64: 1, 8, 128>}]} {
    %c0 = arith.constant 0 : index
    %c0_0 = arith.constant 0 : index
    %0 = vector.load %arg1[%c0, %c0_0] : memref<8x10xf32, #tpu.memory_space<vmem>>, vector<8x10xf32>
    %c0_1 = arith.constant 0 : index
    %c0_2 = arith.constant 0 : index
    %1 = vector.load %arg2[%c0_1, %c0_2] : memref<10x10xf32, #tpu.memory_space<vmem>>, vector<10x10xf32>
    %c0_3 = arith.constant 0 : index
    %c0_4 = arith.constant 0 : index
    %2 = vector.load %arg3[%c0_3, %c0_4] : memref<8x1xi32, #tpu.memory_space<vmem>>, vector<8x1xi32>
    %cst = arith.constant 0.000000e+00 : f32
    %3 = vector.broadcast %cst : f32 to vector<8x10xf32>
    %4 = vector.extract_strided_slice %0 {offsets = [0, 0], sizes = [8, 1], strides = [1, 1]} : vector<8x10xf32> to vector<8x1xf32>
    %5 = vector.extract_strided_slice %1 {offsets = [0, 0], sizes = [1, 10], strides = [1, 1]} : vector<10x10xf32> to vector<1x10xf32>
    %6 = vector.broadcast %4 : vector<8x1xf32> to vector<8x10xf32>
    %7 = vector.broadcast %5 : vector<1x10xf32> to vector<8x10xf32>
    %8 = arith.subf %6, %7 : vector<8x10xf32>
    %9 = math.absf %8 : vector<8x10xf32>
    %10 = arith.addf %3, %9 : vector<8x10xf32>
    %11 = vector.extract_strided_slice %0 {offsets = [0, 1], sizes = [8, 1], strides = [1, 1]} : vector<8x10xf32> to vector<8x1xf32>
    %12 = vector.extract_strided_slice %1 {offsets = [1, 0], sizes = [1, 10], strides = [1, 1]} : vector<10x10xf32> to vector<1x10xf32>
    %13 = vector.broadcast %11 : vector<8x1xf32> to vector<8x10xf32>
    %14 = vector.broadcast %12 : vector<1x10xf32> to vector<8x10xf32>
    %15 = arith.subf %13, %14 : vector<8x10xf32>
    %16 = math.absf %15 : vector<8x10xf32>
    %17 = arith.addf %10, %16 : vector<8x10xf32>
    %18 = vector.extract_strided_slice %0 {offsets = [0, 2], sizes = [8, 1], strides = [1, 1]} : vector<8x10xf32> to vector<8x1xf32>
    %19 = vector.extract_strided_slice %1 {offsets = [2, 0], sizes = [1, 10], strides = [1, 1]} : vector<10x10xf32> to vector<1x10xf32>
    %20 = vector.broadcast %18 : vector<8x1xf32> to vector<8x10xf32>
    %21 = vector.broadcast %19 : vector<1x10xf32> to vector<8x10xf32>
    %22 = arith.subf %20, %21 : vector<8x10xf32>
    %23 = math.absf %22 : vector<8x10xf32>
    %24 = arith.addf %17, %23 : vector<8x10xf32>
    %25 = vector.extract_strided_slice %0 {offsets = [0, 3], sizes = [8, 1], strides = [1, 1]} : vector<8x10xf32> to vector<8x1xf32>
    %26 = vector.extract_strided_slice %1 {offsets = [3, 0], sizes = [1, 10], strides = [1, 1]} : vector<10x10xf32> to vector<1x10xf32>
    %27 = vector.broadcast %25 : vector<8x1xf32> to vector<8x10xf32>
    %28 = vector.broadcast %26 : vector<1x10xf32> to vector<8x10xf32>
    %29 = arith.subf %27, %28 : vector<8x10xf32>
    %30 = math.absf %29 : vector<8x10xf32>
    %31 = arith.addf %24, %30 : vector<8x10xf32>
    %32 = vector.extract_strided_slice %0 {offsets = [0, 4], sizes = [8, 1], strides = [1, 1]} : vector<8x10xf32> to vector<8x1xf32>
    %33 = vector.extract_strided_slice %1 {offsets = [4, 0], sizes = [1, 10], strides = [1, 1]} : vector<10x10xf32> to vector<1x10xf32>
    %34 = vector.broadcast %32 : vector<8x1xf32> to vector<8x10xf32>
    %35 = vector.broadcast %33 : vector<1x10xf32> to vector<8x10xf32>
    %36 = arith.subf %34, %35 : vector<8x10xf32>
    %37 = math.absf %36 : vector<8x10xf32>
    %38 = arith.addf %31, %37 : vector<8x10xf32>
    %39 = vector.extract_strided_slice %0 {offsets = [0, 5], sizes = [8, 1], strides = [1, 1]} : vector<8x10xf32> to vector<8x1xf32>
    %40 = vector.extract_strided_slice %1 {offsets = [5, 0], sizes = [1, 10], strides = [1, 1]} : vector<10x10xf32> to vector<1x10xf32>
    %41 = vector.broadcast %39 : vector<8x1xf32> to vector<8x10xf32>
    %42 = vector.broadcast %40 : vector<1x10xf32> to vector<8x10xf32>
    %43 = arith.subf %41, %42 : vector<8x10xf32>
    %44 = math.absf %43 : vector<8x10xf32>
    %45 = arith.addf %38, %44 : vector<8x10xf32>
    %46 = vector.extract_strided_slice %0 {offsets = [0, 6], sizes = [8, 1], strides = [1, 1]} : vector<8x10xf32> to vector<8x1xf32>
    %47 = vector.extract_strided_slice %1 {offsets = [6, 0], sizes = [1, 10], strides = [1, 1]} : vector<10x10xf32> to vector<1x10xf32>
    %48 = vector.broadcast %46 : vector<8x1xf32> to vector<8x10xf32>
    %49 = vector.broadcast %47 : vector<1x10xf32> to vector<8x10xf32>
    %50 = arith.subf %48, %49 : vector<8x10xf32>
    %51 = math.absf %50 : vector<8x10xf32>
    %52 = arith.addf %45, %51 : vector<8x10xf32>
    %53 = vector.extract_strided_slice %0 {offsets = [0, 7], sizes = [8, 1], strides = [1, 1]} : vector<8x10xf32> to vector<8x1xf32>
    %54 = vector.extract_strided_slice %1 {offsets = [7, 0], sizes = [1, 10], strides = [1, 1]} : vector<10x10xf32> to vector<1x10xf32>
    %55 = vector.broadcast %53 : vector<8x1xf32> to vector<8x10xf32>
    %56 = vector.broadcast %54 : vector<1x10xf32> to vector<8x10xf32>
    %57 = arith.subf %55, %56 : vector<8x10xf32>
    %58 = math.absf %57 : vector<8x10xf32>
    %59 = arith.addf %52, %58 : vector<8x10xf32>
    %60 = vector.extract_strided_slice %0 {offsets = [0, 8], sizes = [8, 1], strides = [1, 1]} : vector<8x10xf32> to vector<8x1xf32>
    %61 = vector.extract_strided_slice %1 {offsets = [8, 0], sizes = [1, 10], strides = [1, 1]} : vector<10x10xf32> to vector<1x10xf32>
    %62 = vector.broadcast %60 : vector<8x1xf32> to vector<8x10xf32>
    %63 = vector.broadcast %61 : vector<1x10xf32> to vector<8x10xf32>
    %64 = arith.subf %62, %63 : vector<8x10xf32>
    %65 = math.absf %64 : vector<8x10xf32>
    %66 = arith.addf %59, %65 : vector<8x10xf32>
    %67 = vector.extract_strided_slice %0 {offsets = [0, 9], sizes = [8, 1], strides = [1, 1]} : vector<8x10xf32> to vector<8x1xf32>
    %68 = vector.extract_strided_slice %1 {offsets = [9, 0], sizes = [1, 10], strides = [1, 1]} : vector<10x10xf32> to vector<1x10xf32>
    %69 = vector.broadcast %67 : vector<8x1xf32> to vector<8x10xf32>
    %70 = vector.broadcast %68 : vector<1x10xf32> to vector<8x10xf32>
    %71 = arith.subf %69, %70 : vector<8x10xf32>
    %72 = math.absf %71 : vector<8x10xf32>
    %73 = arith.addf %66, %72 : vector<8x10xf32>
    %74 = tpu.iota {dimensions = array<i32: 1>} : vector<8x10xi32>
    %75 = vector.broadcast %2 : vector<8x1xi32> to vector<8x10xi32>
    %76 = arith.cmpi eq, %75, %74 : vector<8x10xi32>
    %77 = arith.extui %76 : vector<8x10xi1> to vector<8x10xi32>
    %78 = arith.sitofp %77 : vector<8x10xi32> to vector<8x10xf32>
    %79 = arith.mulf %73, %78 : vector<8x10xf32>
    %cst_5 = arith.constant dense<0.000000e+00> : vector<8xf32>
    %80 = vector.multi_reduction <add>, %79, %cst_5 [1] : vector<8x10xf32> to vector<8xf32>
    %81 = vector.shape_cast %80 : vector<8xf32> to vector<8x1xf32>
    %82 = vector.broadcast %81 : vector<8x1xf32> to vector<8x10xf32>
    %83 = arith.subf %82, %73 : vector<8x10xf32>
    %cst_6 = arith.constant 0.000000e+00 : f32
    %84 = vector.broadcast %cst_6 : f32 to vector<8x10xf32>
    %85 = arith.maximumf %83, %84 : vector<8x10xf32>
    %86 = vector.broadcast %cst_6 : f32 to vector<8x10xf32>
    %87 = arith.subf %83, %86 : vector<8x10xf32>
    %88 = arith.cmpf one, %87, %87 : vector<8x10xf32>
    %89 = vector.broadcast %cst_6 : f32 to vector<8x10xf32>
    %90 = arith.addf %83, %89 : vector<8x10xf32>
    %91 = math.absf %87 : vector<8x10xf32>
    %cst_7 = arith.constant 0.000000e+00 : f32
    %92 = vector.broadcast %cst_7 : f32 to vector<8x10xf32>
    %93 = arith.subf %92, %91 : vector<8x10xf32>
    %94 = math.exp %93 : vector<8x10xf32>
    %95 = math.log1p %94 : vector<8x10xf32>
    %96 = arith.addf %85, %95 : vector<8x10xf32>
    %97 = arith.select %88, %90, %96 : vector<8x10xi1>, vector<8x10xf32>
    %c8_i32 = arith.constant 8 : i32
    %98 = arith.muli %arg0, %c8_i32 : i32
    %99 = tpu.iota {dimensions = array<i32: 0>} : vector<8x1xi32>
    %100 = vector.broadcast %98 : i32 to vector<8x1xi32>
    %101 = arith.addi %100, %99 : vector<8x1xi32>
    %c8_i32_8 = arith.constant 8 : i32
    %102 = vector.broadcast %c8_i32_8 : i32 to vector<8x1xi32>
    %103 = arith.cmpi slt, %101, %102 : vector<8x1xi32>
    %104 = arith.extui %103 : vector<8x1xi1> to vector<8x1xi32>
    %105 = arith.sitofp %104 : vector<8x1xi32> to vector<8x1xf32>
    %cst_9 = arith.constant dense<0.000000e+00> : vector<8xf32>
    %106 = vector.multi_reduction <add>, %97, %cst_9 [1] : vector<8x10xf32> to vector<8xf32>
    %107 = vector.shape_cast %106 : vector<8xf32> to vector<8x1xf32>
    %cst_10 = arith.constant 0.693147182 : f32
    %108 = vector.broadcast %cst_10 : f32 to vector<8x1xf32>
    %109 = arith.subf %107, %108 : vector<8x1xf32>
    %110 = arith.mulf %109, %105 : vector<8x1xf32>
    %111 = vector.shape_cast %110 : vector<8x1xf32> to vector<1x8x1xf32>
    %cst_11 = arith.constant dense<0.000000e+00> : vector<1xf32>
    %112 = vector.multi_reduction <add>, %111, %cst_11 [1, 2] : vector<1x8x1xf32> to vector<1xf32>
    %113 = vector.shape_cast %112 : vector<1xf32> to vector<1x1x1xf32>
    %114 = vector.extract %113[0, 0, 0] : f32 from vector<1x1x1xf32>
    %cst_12 = arith.constant 0.013888889 : f32
    %115 = arith.mulf %114, %cst_12 : f32
    %116 = vector.broadcast %115 : f32 to vector<1x8x128xf32>
    %c0_13 = arith.constant 0 : index
    %c0_14 = arith.constant 0 : index
    %c0_15 = arith.constant 0 : index
    %117 = vector.load %arg4[%c0_13, %c0_14, %c0_15] : memref<1x8x128xf32, #tpu.memory_space<vmem>>, vector<1x8x128xf32>
    tpu.vector_store %arg4[%c0_13, %c0_14, %c0_15], %116 {strides = array<i32>} : memref<1x8x128xf32, #tpu.memory_space<vmem>>, vector<1x8x128xf32>,
    return
  }
  func.func @transform_0(%arg0: i32) -> (i32, i32) {
    %c0_i32 = arith.constant 0 : i32
    %c0_i32_0 = arith.constant 0 : i32
    return %arg0, %c0_i32 : i32, i32
  }
  func.func @transform_1(%arg0: i32) -> (i32, i32) {
    %c0_i32 = arith.constant 0 : i32
    %c0_i32_0 = arith.constant 0 : i32
    %c0_i32_1 = arith.constant 0 : i32
    return %c0_i32, %c0_i32_0 : i32, i32
  }
  func.func @transform_2(%arg0: i32) -> (i32, i32) {
    %c0_i32 = arith.constant 0 : i32
    %c0_i32_0 = arith.constant 0 : i32
    return %arg0, %c0_i32 : i32, i32
  }
  func.func @transform_3(%arg0: i32) -> (i32, i32, i32) {
    %c0_i32 = arith.constant 0 : i32
    %c0_i32_0 = arith.constant 0 : i32
    %c0_i32_1 = arith.constant 0 : i32
    return %arg0, %c0_i32, %c0_i32_0 : i32, i32, i32
  }
}

</mosaic_0001>

<bundles_post_ra>
// kernel: tpu_custom_call.1
= control target key start
LH: loop header
LB: loop body
LE: loop exit
PB: predicated region body
PF: predicated region fallthrough
CT: control target
= control target key end

     0   :  { %8 = vsyncpa [#allocation3], 0  ;;  %s368_s0 = inlined_call_operand.vmem [shape: f32[8,10], index: 0, kind: input, shape index: {}]   ;;  %s369_s1 = inlined_call_operand.hbm [shape: f32[10,10], index: 1, kind: input, shape index: {}]   ;;  %s370_s2 = inlined_call_operand.vmem [shape: s32[8,1], index: 2, kind: input, shape index: {}]   ;;  %s371_s3 = inlined_call_operand.hbm [shape: f32[1,8,128], index: 3, kind: output, shape index: {}]  }
   0x1   :  { %9 = vsyncpa [#allocation4], 0  ;;  %s301_s12 = smov [#allocation2]   ;;  %s253_s16 = scalar_lea.hbm %s369_s1, 256 }
   0x2   :  { %s17_s13 = sshll.u32 %s301_s12, 4  ;;  %p254_p0 = scmp.ne.s32.totalorder %s369_s1, %s253_s16  ;;  %s18_s13 = int_to_ptr.vmem [resolvable:$true] %s17_s13 }
   0x3   :  { %p257_p1 = scmp.lt.u32.totalorder %s253_s16, %s369_s1 }
   0x5   :  { %p259_p2 = pnand %p257_p1, %p254_p0 }
   0x7   :  { %262 = shalt.err (!%p259_p2)
}
   0x8   :  { %s263_s21 = scalar_lea.vmem %s18_s13, 256  ;;  %p268_p4 = scmp.lt.s32.totalorder %s18_s13, %s18_s13 }
   0x9   :  { %p264_p3 = scmp.ne.s32.totalorder %s18_s13, %s263_s21  ;;  %p269_p5 = scmp.lt.s32.totalorder %s263_s21, %s263_s21 }
   0xb   :  { %p270_p6 = por %p269_p5, %p268_p4 }
   0xd   :  { %p271_p7 = pnand %p270_p6, %p264_p3 }
   0xf   :  { %274 = shalt.err (!%p271_p7)
}
  0x10   :  { %s302_s22 = smov 128   ;;  %s303_s23 = smov 8  }
  0x11   :  { %23 = dma.hbm_to_vmem [thread:$0]  %s369_s1, 256, %s18_s13, [#allocation3], %s302_s22, %s302_s22, %s303_s23  }
  0x12   :  { %297 = dma.done.wait [#allocation3], 256  }
  0x13   :  { %298 = vsyncadd [#allocation3], 4294967040  ;;  %v304_v0 = vmov 2   ;;  %v305_v1 = vmov 0   ;;  %v29_v2 = vld [vmem:[%s368_s0] sm:$0xff]  ;;  %v306_v3 = vmov 3   ;;  %v38_v12 = vlaneseq }
  0x14   :  { %239 = vset.pattern.permute.xlu1 %v304_v0  ;;  %237 = vset.pattern.permute.xlu0 %v305_v1  ;;  %v307_v4 = vmov 1   ;;  %v308_v5 = vmov 4   ;;  %v309_v6 = vmov 5   ;;  %v310_v7 = vmov 6   ;;  %v32_v11 = vld [vmem:[%s370_s2] sm:$0xff]  ;;  %s315_s2 = smov [#allocation5]  }
  0x15   :  { %57 = vperm.xlu1 %239, %v29_v2   ;;  %35 = vperm.xlu0 %237, %v29_v2   ;;  %v311_v8 = vmov 8   ;;  %v312_v9 = vmov 7   ;;  %v313_v10 = vmov 9   ;;  %v39_v13 = vshrl.u32 %v38_v12, 7  ;;  %v30_v15 = vld [vmem:[#allocation2] sm:$0xff]  ;;  %s209_s28 = sshll.u32 %s315_s2, 4  ;;  %s210_s28 = int_to_ptr.vmem [resolvable:$true] %s209_s28 }
  0x16   :  { %v31_v47 = vld [vmem:[#allocation2 + $0x8] sm:$0x3]  ;;  %vm153_vm1 = vcmask 80896   ;;  %vm189_vm4 = vcmask 7168   ;;  %s275_s4 = scalar_lea.vmem %s210_s28, 128  ;;  %p280_p9 = scmp.lt.s32.totalorder %s210_s28, %s210_s28 }
  0x17   :  { %v40_v14 = vsub.s32 0, %v39_v13  ;;  %v62_v16 = vsub.s32 2, %v39_v13  ;;  %v51_v18 = vsub.s32 1, %v39_v13  ;;  %v73_v21 = vsub.s32 3, %v39_v13  ;;  %p276_p8 = scmp.ne.s32.totalorder %s210_s28, %s275_s4  ;;  %p281_p10 = scmp.lt.s32.totalorder %s275_s4, %s275_s4 }
  0x18   :  { %v84_v25 = vsub.s32 4, %v39_v13  ;;  %v95_v26 = vsub.s32 5, %v39_v13  ;;  %v106_v37 = vsub.s32 6, %v39_v13  ;;  %v117_v49 = vsub.s32 7, %v39_v13 }
  0x19   :  { %240 = vset.pattern.permute.xlu1 %v306_v3  ;;  %238 = vset.pattern.permute.xlu0 %v307_v4  ;;  %v41_v17 = vrot.slane %v30_v15, %v40_v14  ;;  %v63_v22 = vrot.slane %v30_v15, %v62_v16  ;;  %v52_v24 = vrot.slane %v30_v15, %v51_v18  ;;  %p282_p11 = por %p281_p10, %p280_p9 }
  0x1a   :  { %68 = vperm.xlu1 %240, %v29_v2   ;;  %46 = vperm.xlu0 %238, %v29_v2   ;;  %v74_v27 = vrot.slane %v30_v15, %v73_v21  ;;  %v85_v33 = vrot.slane %v30_v15, %v84_v25  ;;  %v96_v34 = vrot.slane %v30_v15, %v95_v26 }
  0x1b   :  { %v107_v46 = vrot.slane %v30_v15, %v106_v37  ;;  %v129_v53 = vrot.slane %v31_v47, %v40_v14  ;;  %v118_v57 = vrot.slane %v30_v15, %v117_v49  ;;  %v140_v63 = vrot.slane %v31_v47, %v51_v18  ;;  %p283_p12 = pnand %p282_p11, %p276_p8 }
  0x1e   :  { %241 = vset.pattern.permute.xlu1 %v308_v5  ;;  %242 = vset.pattern.permute.xlu0 %v309_v6 }
  0x1f   :  { %79 = vperm.xlu1 %241, %v29_v2   ;;  %90 = vperm.xlu0 %242, %v29_v2  }
  0x23   :  { %243 = vset.pattern.permute.xlu1 %v310_v7  ;;  %245 = vset.pattern.permute.xlu0 %v311_v8  ;;  %v145_v7 = vand.u32 127, %v38_v12 }
  0x24   :  { %101 = vperm.xlu1 %243, %v29_v2   ;;  %123 = vperm.xlu0 %245, %v29_v2  }
  0x28   :  { %244 = vset.pattern.permute.xlu1 %v312_v9  ;;  %248 = vset.pattern.permute.xlu0 %v305_v1 }
  0x29   :  { %112 = vperm.xlu1 %244, %v29_v2  }
  0x2d   :  { %246 = vset.pattern.permute.xlu1 %v313_v10 }
  0x2e   :  { %134 = vperm.xlu1 %246, %v29_v2  }
  0x32   :  { %247 = vset.pattern.permute.xlu1 %v305_v1 }
  0x33   :  { %147 = vperm.xlu1 %247, %v32_v11   ;;  %v314_v11 = vmov 0.0  }
  0x94   :  { %v58_v19 = vpop.permute.xlu1 %57  ;;  %v36_v20 = vpop.permute.xlu0 %35 }
  0x95   :  { %v42_v23 = vsub.f32 %v36_v20, %v41_v17  ;;  %v64_v30 = vsub.f32 %v58_v19, %v63_v22 }
  0x97   :  { %v43_v31 = vand.u32 2147483647, %v42_v23  ;;  %v65_v38 = vand.u32 2147483647, %v64_v30 }
  0x99   :  { %v69_v28 = vpop.permute.xlu1 %68  ;;  %v47_v29 = vpop.permute.xlu0 %46 }
  0x9a   :  { %v53_v32 = vsub.f32 %v47_v29, %v52_v24  ;;  %v75_v35 = vsub.f32 %v69_v28, %v74_v27 }
  0x9c   :  { %v54_v36 = vand.u32 2147483647, %v53_v32  ;;  %v76_v44 = vand.u32 2147483647, %v75_v35 }
  0x9e   :  { %v55_v39 = vadd.f32 %v54_v36, %v43_v31  ;;  %v80_v40 = vpop.permute.xlu1 %79  ;;  %v91_v41 = vpop.permute.xlu0 %90 }
  0x9f   :  { %v86_v42 = vsub.f32 %v80_v40, %v85_v33  ;;  %v97_v43 = vsub.f32 %v91_v41, %v96_v34 }
  0xa0   :  { %v66_v45 = vadd.f32 %v65_v38, %v55_v39 }
  0xa1   :  { %v87_v48 = vand.u32 2147483647, %v86_v42  ;;  %v98_v51 = vand.u32 2147483647, %v97_v43 }
  0xa2   :  { %v77_v50 = vadd.f32 %v76_v44, %v66_v45 }
  0xa3   :  { %v102_v52 = vpop.permute.xlu1 %101  ;;  %v124_v56 = vpop.permute.xlu0 %123 }
  0xa4   :  { %v88_v54 = vadd.f32 %v87_v48, %v77_v50  ;;  %v108_v55 = vsub.f32 %v102_v52, %v107_v46  ;;  %v130_v60 = vsub.f32 %v124_v56, %v129_v53 }
  0xa6   :  { %v99_v58 = vadd.f32 %v98_v51, %v88_v54  ;;  %v109_v59 = vand.u32 2147483647, %v108_v55  ;;  %v131_v2 = vand.u32 2147483647, %v130_v60 }
  0xa8   :  { %v113_v61 = vpop.permute.xlu1 %112  ;;  %v110_v0 = vadd.f32 %v109_v59, %v99_v58 }
  0xa9   :  { %v119_v62 = vsub.f32 %v113_v61, %v118_v57 }
  0xab   :  { %v120_v1 = vand.u32 2147483647, %v119_v62 }
  0xad   :  { %v121_v3 = vadd.f32 %v120_v1, %v110_v0  ;;  %v135_v4 = vpop.permute.xlu1 %134 }
  0xae   :  { %v141_v5 = vsub.f32 %v135_v4, %v140_v63 }
  0xaf   :  { %v132_v6 = vadd.f32 %v131_v2, %v121_v3 }
  0xb0   :  { %v142_v8 = vand.u32 2147483647, %v141_v5 }
  0xb2   :  { %v143_v9 = vadd.f32 %v142_v8, %v132_v6  ;;  %v148_v10 = vpop.permute.xlu1 %147 }
  0xb3   :  { %vm149_vm0 = vcmp.eq.s32.totalorder %v148_v10, %v145_v7 }
  0xb4   :  { %v218_v13 = vsel %vm149_vm0, 1.0, %v314_v11 }
  0xb5   :  { %v152_v14 = vmul.f32 %v218_v13, %v143_v9 }
  0xb7   :  { %v154_v15 = vsel %vm153_vm1, %v152_v14, 0.0 }
  0xb8   :  { %155 = vadd.xlane.f32.xlu0 %v154_v15 }
 0x145   :  { %v156_v16 = vpop.xlane.xlu0 %155 }
 0x146   :  { %v157_v17 = vsub.f32 %v156_v16, %v143_v9 }
 0x148   :  { %v161_v18 = vand.u32 2147483647, %v157_v17  ;;  %v158_v28 = vmax.f32 %v157_v17, 0.0  ;;  %vm159_vm3 = vcmp.ne.f32.partialorder %v157_v17, %v157_v17 }
 0x14a   :  { %v162_v19 = vsub.f32 0.0, %v161_v18 }
 0x14c   :  { %v163_v20 = vmul.f32 1.442695, %v162_v19 }
 0x14e   :  { %249 = vpow2.f32 %v163_v20 }
 0x158   :  { %v250_v21 = vpop.eup %249 }
 0x159   :  { %v165_v22 = vadd.f32 1.0, %v250_v21  ;;  %v168_v12 = vmul.f32 -0.5, %v250_v21  ;;  %v171_v24 = vand.u32 2147483647, %v250_v21 }
 0x15b   :  { %251 = vlog2.f32 %v165_v22  ;;  %v169_v23 = vadd.f32 1.0, %v168_v12  ;;  %vm172_vm2 = vcmp.lt.f32.partialorder %v171_v24, 0.0004427343 }
 0x15d   :  { %v170_v27 = vmul.f32 %v250_v21, %v169_v23 }
 0x165   :  { %v252_v25 = vpop.eup %251 }
 0x166   :  { %v167_v26 = vmul.f32 0.6931472, %v252_v25 }
 0x168   :  { %v173_v29 = vsel %vm172_vm2, %v170_v27, %v167_v26 }
 0x169   :  { %v174_v30 = vadd.f32 %v173_v29, %v158_v28 }
 0x16b   :  { %v175_v31 = vsel %vm159_vm3, %v157_v17, %v174_v30 }
 0x16c   :  { %v184_v32 = vsel %vm153_vm1, %v175_v31, 0.0 }
 0x16d   :  { %185 = vadd.xlane.f32.xlu1 %v184_v32 }
 0x1fa   :  { %v186_v33 = vpop.xlane.xlu1 %185 }
 0x1fb   :  { %v219_v34 = vadd.f32 -0.6931472, %v186_v33 }
 0x1fd   :  { %v190_v35 = vsel %vm189_vm4, %v219_v34, 0.0 }
 0x1fe   :  { %191 = vadd.xlane.f32.xlu0 %v190_v35 }
 0x28b   :  { %v192_v36 = vpop.xlane.xlu0 %191 }
 0x28c   :  { %v193_v37 = vrot.slane %v192_v36, 4 }
 0x28e   :  { %v194_v38 = vadd.f32 %v193_v37, %v192_v36 }
 0x290   :  { %v195_v39 = vrot.slane %v194_v38, 2 }
 0x292   :  { %v196_v40 = vadd.f32 %v195_v39, %v194_v38 }
 0x294   :  { %v197_v41 = vrot.slane %v196_v40, 1 }
 0x296   :  { %v198_v42 = vadd.f32 %v197_v41, %v196_v40 }
 0x298   :  { %220 = vpush %v198_v42 }
 0x2c9   :  { %s221_s29 = spop %220 }
 0x2ca   :  { %s200_s30 = smul.f32 0.013888889, %s221_s29 }
 0x2cc   :  { %v201_v43 = vstv %s200_s30 }
 0x2cd   :  { %202 = vst [vmem:[#allocation5] sm:$0xff] %v201_v43 }
 0x2ce   :  { %286 = shalt.err (!%p283_p12)
}
 0x2cf   :  { %s287_s7 = scalar_lea.hbm %s371_s3, 128 }
 0x2d0   :  { %p288_p13 = scmp.ne.s32.totalorder %s371_s3, %s287_s7  ;;  %p291_p0 = scmp.lt.u32.totalorder %s287_s7, %s371_s3 }
 0x2d2   :  { %p293_p1 = pnand %p291_p0, %p288_p13 }
 0x2d4   :  { %296 = shalt.err (!%p293_p1)
}
 0x2d5   :  { %212 = dma.vmem_to_hbm [thread:$0]  %s210_s28, 128, %s371_s3, [#allocation4]  }
 0x2d6   :  { %299 = dma.done.wait [#allocation4], 128  }
 0x2d7   :  { %300 = vsyncadd [#allocation4], 4294967168 }
 0x2d8   :  { %216 = vsyncpa [#allocation3], 1 }
 0x2d9   :  { %217 = vsyncpa [#allocation4], 1 }

</bundles_post_ra>
